<compile_context>
chip_gen: v6e
topology: v6e:2x2x1
jax: 0.10.0
libtpu: 0.0.40
codegen_flags: <defaults>
</compile_context>

<pallas_src>
import functools

import jax
import jax.numpy as jnp
from jax.experimental import pallas as pl
from jax.experimental.pallas import tpu as pltpu


def _round_up(x, m):
    return ((x + m - 1) // m) * m


def _critic_kernel(state_size, sa_ref, w1_ref, b1_ref, w2s_ref, w2a_ref,
                   b2_ref, w3_ref, b3_ref, out_ref):
    # Single merged (state || action) bf16 input stream.
    sa = sa_ref[...]                       # (TB, S+A) bf16
    s = sa[:, :state_size]                 # (TB, S)  bf16
    a = sa[:, state_size:]                 # (TB, A)  bf16

    # fcs1: Linear(S -> F1), bf16 operands, f32 MXU accumulation.
    xs = jnp.dot(s, w1_ref[...], preferred_element_type=jnp.float32) + b1_ref[...]
    xs = jnp.maximum(xs, 0.01 * xs)        # leaky_relu (slope 0.01)

    # fc2 on cat(xs, action): split-weight form avoids an in-kernel concat.
    h = (jnp.dot(xs.astype(jnp.bfloat16), w2s_ref[...],
                 preferred_element_type=jnp.float32)
         + jnp.dot(a, w2a_ref[...], preferred_element_type=jnp.float32)
         + b2_ref[...])
    h = jnp.maximum(h, 0.01 * h)

    # fc3: Linear(F2 -> 1) as a VPU multiply + cross-lane sum (f32 throughout;
    # the MXU would waste an N=1 contraction and is not the binding unit).
    out_ref[...] = (jnp.sum(h * w3_ref[...], axis=-1, keepdims=True)
                    + b3_ref[...])


def critic_forward(state, action, params, *, block_b=4096):
    """state: (B, state_size) f32, action: (B, action_size) f32 -> (B, 1) f32."""
    w1, b1, w2s, w2a, b2, w3r, b3 = params
    B, S = state.shape
    A = action.shape[1]
    F1 = w1.shape[1]
    F2 = w2s.shape[1]

    # Batch tile: multiple of 8 (f32/bf16 sublane), at most block_b, and also
    # capped at ~ceil(B/2) so the grid has >= 2 steps whenever B is large
    # enough to split (keeps the second v7x TensorCore busy).
    block_cap = max(8, (block_b // 8) * 8)
    half_cap = max(8, _round_up(pl.cdiv(B, 2), 8))
    TB = min(block_cap, half_cap)
    Bp = _round_up(B, TB)

    # One merged, lane-padded input stream instead of two narrow ones.
    sa = jnp.concatenate([state, action], axis=1)
    if Bp != B:
        sa = jnp.pad(sa, ((0, Bp - B), (0, 0)))
    sa = sa.astype(jnp.bfloat16)

    # bf16 matmul operands; biases, fc3 row and accumulation stay f32.
    w1b = w1.astype(jnp.bfloat16)
    w2sb = w2s.astype(jnp.bfloat16)
    w2ab = w2a.astype(jnp.bfloat16)

    grid = (Bp // TB,)

    batch_spec = pl.BlockSpec((TB, S + A), lambda i: (i, 0))
    # VMEM-resident parameters: constant block index -> fetched once and
    # reused every grid step (double-buffer cost is only ~150 KiB, so we skip
    # pl.Buffered(1) to keep lowering maximally portable).
    const_spec = lambda shape: pl.BlockSpec(shape, lambda i: (0, 0))

    in_specs = [
        batch_spec,                 # merged state||action
        const_spec((S, F1)),        # w1
        const_spec((1, F1)),        # b1
        const_spec((F1, F2)),       # w2 (state branch)
        const_spec((A, F2)),        # w2 (action branch)
        const_spec((1, F2)),        # b2
        const_spec((1, F2)),        # w3 row
        const_spec((1, 1)),         # b3
    ]
    out_specs = pl.BlockSpec((TB, 1), lambda i: (i, 0))

    # Generation-aware VMEM budget: ~3/4 of physical VMEM, capped at 96 MiB
    # (v5e/v6e: 128 MiB, v7x: 64 MiB per TensorCore).
    try:
        vmem_cap = int(pltpu.get_tpu_info().vmem_capacity_bytes)
    except Exception:
        vmem_cap = 64 * 1024 * 1024
    vmem_limit = max(32 * 1024 * 1024,
                     min(96 * 1024 * 1024, (vmem_cap * 3) // 4))

    flops = 2 * Bp * (S * F1 + (F1 + A) * F2 + F2)
    bytes_accessed = (2 * (Bp * (S + A) + S * F1 + (F1 + A) * F2)   # bf16
                      + 4 * (Bp + F1 + F2 + F2 + 1))                # f32

    q = pl.pallas_call(
        functools.partial(_critic_kernel, S),
        out_shape=jax.ShapeDtypeStruct((Bp, 1), jnp.float32),
        grid=grid,
        in_specs=in_specs,
        out_specs=out_specs,
        compiler_params=pltpu.CompilerParams(
            dimension_semantics=("parallel",),
            vmem_limit_bytes=vmem_limit,
        ),
        cost_estimate=pl.CostEstimate(
            flops=flops, transcendentals=0, bytes_accessed=bytes_accessed),
    )(sa, w1b, b1, w2sb, w2ab, b2, w3r, b3)

    if Bp != B:
        q = q[:B]
    return q


def init_critic_params(key, state_size, action_size,
                       fcs1_units=256, fc2_units=128):
    """Deterministic init mirroring Critic.__init__/reset_parameters shapes.

    Weights are built directly in (in_features, out_features) layout; fc2's
    weight is produced as two blocks (state part, action part); fc3's weight
    is stored as a (1, fc2_units) row for the in-kernel multiply-reduce.
    Master copies are f32; the wrapper casts matmul operands to bf16."""
    ks = jax.random.split(key, 6)

    # fcs1: weight uniform(+-1/sqrt(fan)), bias default uniform(+-1/sqrt(in))
    lim1 = 1.0 / jnp.sqrt(jnp.float32(fcs1_units))   # hidden_init uses size()[0]
    w1 = jax.random.uniform(ks[0], (state_size, fcs1_units),
                            minval=-lim1, maxval=lim1, dtype=jnp.float32)
    b1 = jax.random.uniform(ks[1], (1, fcs1_units),
                            minval=-1.0 / jnp.sqrt(jnp.float32(state_size)),
                            maxval=1.0 / jnp.sqrt(jnp.float32(state_size)),
                            dtype=jnp.float32)

    # fc2: in = fcs1_units + action_size
    fc2_in = fcs1_units + action_size
    lim2 = 1.0 / jnp.sqrt(jnp.float32(fc2_units))
    w2 = jax.random.uniform(ks[2], (fc2_in, fc2_units),
                            minval=-lim2, maxval=lim2, dtype=jnp.float32)
    w2s, w2a = w2[:fcs1_units, :], w2[fcs1_units:, :]
    b2 = jax.random.uniform(ks[3], (1, fc2_units),
                            minval=-1.0 / jnp.sqrt(jnp.float32(fc2_in)),
                            maxval=1.0 / jnp.sqrt(jnp.float32(fc2_in)),
                            dtype=jnp.float32)

    # fc3: weight uniform(-3e-3, 3e-3), stored as a row (1, fc2_units)
    w3r = jax.random.uniform(ks[4], (1, fc2_units),
                             minval=-3e-3, maxval=3e-3, dtype=jnp.float32)
    b3 = jax.random.uniform(ks[5], (1, 1),
                            minval=-1.0 / jnp.sqrt(jnp.float32(fc2_units)),
                            maxval=1.0 / jnp.sqrt(jnp.float32(fc2_units)),
                            dtype=jnp.float32)

    return (w1, b1, w2s, w2a, b2, w3r, b3)


def _reference_forward_f32(state, action, params):
    """Plain-JAX full-f32 reference (PyTorch semantics)."""
    w1, b1, w2s, w2a, b2, w3r, b3 = params
    leaky = lambda x: jnp.maximum(x, 0.01 * x)
    xs = leaky(state @ w1 + b1)
    h = leaky(xs @ w2s + action @ w2a + b2)
    return h @ w3r.T + b3


def _reference_forward_bf16(state, action, params):
    """Plain-JAX reference matching the kernel's mixed precision
    (bf16 matmul operands, f32 accumulation) for a tight correctness check."""
    w1, b1, w2s, w2a, b2, w3r, b3 = params
    bf = jnp.bfloat16
    leaky = lambda x: jnp.maximum(x, 0.01 * x)
    xs = leaky(jnp.dot(state.astype(bf), w1.astype(bf),
                       preferred_element_type=jnp.float32) + b1)
    h = leaky(jnp.dot(xs.astype(bf), w2s.astype(bf),
                      preferred_element_type=jnp.float32)
              + jnp.dot(action.astype(bf), w2a.astype(bf),
                        preferred_element_type=jnp.float32)
              + b2)
    return jnp.sum(h * w3r, axis=-1, keepdims=True) + b3


if __name__ == "__main__":
    STATE, ACTION = 16, 4
    key = jax.random.PRNGKey(0)
    k_state, k_action, k_params = jax.random.split(key, 3)
    params = init_critic_params(k_params, STATE, ACTION)

    # Small primary check (B=2, padded internally to one 8-row tile).
    B = 2
    state = jax.random.normal(k_state, (B, STATE), dtype=jnp.float32)
    action = jax.random.normal(k_action, (B, ACTION), dtype=jnp.float32)
    q = critic_forward(state, action, params)
    jax.block_until_ready(q)
    assert q.shape == (B, 1)
    q_ref16 = _reference_forward_bf16(state, action, params)
    q_ref32 = _reference_forward_f32(state, action, params)
    assert jnp.allclose(q, q_ref16, atol=1e-4, rtol=1e-4), (q, q_ref16)
    assert jnp.allclose(q, q_ref32, atol=1e-2, rtol=1e-2), (q, q_ref32)

    # Multi-tile grid check (exercises batch tiling + padding + >=2 grid steps).
    B2 = 20
    state2 = jax.random.normal(jax.random.fold_in(k_state, 1), (B2, STATE),
                               dtype=jnp.float32)
    action2 = jax.random.normal(jax.random.fold_in(k_action, 1), (B2, ACTION),
                                dtype=jnp.float32)
    q2 = critic_forward(state2, action2, params, block_b=8)
    jax.block_until_ready(q2)
    assert q2.shape == (B2, 1)
    q2_ref16 = _reference_forward_bf16(state2, action2, params)
    q2_ref32 = _reference_forward_f32(state2, action2, params)
    assert jnp.allclose(q2, q2_ref16, atol=1e-4, rtol=1e-4), (q2, q2_ref16)
    assert jnp.allclose(q2, q2_ref32, atol=1e-2, rtol=1e-2), (q2, q2_ref32)

    print("KERNEL_OK")
</pallas_src>

<mosaic_0001>
module attributes {stable_mosaic.version = 11 : i64} {
  func.func @_critic_kernel(%arg0: i32, %arg1: memref<8x20xbf16, #tpu.memory_space<vmem>>, %arg2: memref<16x256xbf16, #tpu.memory_space<vmem>>, %arg3: memref<1x256xf32, #tpu.memory_space<vmem>>, %arg4: memref<256x128xbf16, #tpu.memory_space<vmem>>, %arg5: memref<4x128xbf16, #tpu.memory_space<vmem>>, %arg6: memref<1x128xf32, #tpu.memory_space<vmem>>, %arg7: memref<1x128xf32, #tpu.memory_space<vmem>>, %arg8: memref<1x1xf32, #tpu.memory_space<vmem>>, %arg9: memref<8x1xf32, #tpu.memory_space<vmem>>) attributes {dimension_semantics = [#tpu.dimension_semantics<parallel>], iteration_bounds = array<i64: 1>, scalar_prefetch = 0 : i64, scratch_operands = 0 : i64, tpu.core_type = #tpu.core_type<tc>, window_params = [{transform_indices = @transform_0, window_bounds = array<i64: 8, 20>}, {pipeline_mode = #tpu.pipeline_mode<synchronous>, transform_indices = @transform_1, window_bounds = array<i64: 16, 256>}, {pipeline_mode = #tpu.pipeline_mode<synchronous>, transform_indices = @transform_2, window_bounds = array<i64: 1, 256>}, {pipeline_mode = #tpu.pipeline_mode<synchronous>, transform_indices = @transform_3, window_bounds = array<i64: 256, 128>}, {pipeline_mode = #tpu.pipeline_mode<synchronous>, transform_indices = @transform_4, window_bounds = array<i64: 4, 128>}, {pipeline_mode = #tpu.pipeline_mode<synchronous>, transform_indices = @transform_5, window_bounds = array<i64: 1, 128>}, {pipeline_mode = #tpu.pipeline_mode<synchronous>, transform_indices = @transform_6, window_bounds = array<i64: 1, 128>}, {pipeline_mode = #tpu.pipeline_mode<synchronous>, transform_indices = @transform_7, window_bounds = array<i64: 1, 1>}, {transform_indices = @transform_8, window_bounds = array<i64: 8, 1>}]} {
    %c0 = arith.constant 0 : index
    %c0_0 = arith.constant 0 : index
    %0 = vector.load %arg1[%c0, %c0_0] : memref<8x20xbf16, #tpu.memory_space<vmem>>, vector<8x20xbf16>
    %1 = vector.extract_strided_slice %0 {offsets = [0, 0], sizes = [8, 16], strides = [1, 1]} : vector<8x20xbf16> to vector<8x16xbf16>
    %2 = vector.extract_strided_slice %0 {offsets = [0, 16], sizes = [8, 4], strides = [1, 1]} : vector<8x20xbf16> to vector<8x4xbf16>
    %c0_1 = arith.constant 0 : index
    %c0_2 = arith.constant 0 : index
    %3 = vector.load %arg2[%c0_1, %c0_2] : memref<16x256xbf16, #tpu.memory_space<vmem>>, vector<16x256xbf16>
    %cst = arith.constant dense<0.000000e+00> : vector<8x256xf32>
    %4 = tpu.matmul %1, %3, %cst {dimension_numbers = #tpu.dot_dimension_numbers<[1], [0], [0], [1], [0, 0, 1, 1], [], []>} : vector<8x16xbf16>, vector<16x256xbf16>, vector<8x256xf32> -> vector<8x256xf32>
    %c0_3 = arith.constant 0 : index
    %c0_4 = arith.constant 0 : index
    %5 = vector.load %arg3[%c0_3, %c0_4] : memref<1x256xf32, #tpu.memory_space<vmem>>, vector<1x256xf32>
    %6 = vector.broadcast %5 : vector<1x256xf32> to vector<8x256xf32>
    %7 = arith.addf %4, %6 : vector<8x256xf32>
    %cst_5 = arith.constant 0.00999999977 : f32
    %8 = vector.broadcast %cst_5 : f32 to vector<8x256xf32>
    %9 = arith.mulf %8, %7 : vector<8x256xf32>
    %10 = arith.maximumf %7, %9 : vector<8x256xf32>
    %11 = arith.truncf %10 : vector<8x256xf32> to vector<8x256xbf16>
    %c0_6 = arith.constant 0 : index
    %c0_7 = arith.constant 0 : index
    %12 = vector.load %arg4[%c0_6, %c0_7] : memref<256x128xbf16, #tpu.memory_space<vmem>>, vector<256x128xbf16>
    %cst_8 = arith.constant dense<0.000000e+00> : vector<8x128xf32>
    %13 = tpu.matmul %11, %12, %cst_8 {dimension_numbers = #tpu.dot_dimension_numbers<[1], [0], [0], [1], [0, 0, 1, 1], [], []>} : vector<8x256xbf16>, vector<256x128xbf16>, vector<8x128xf32> -> vector<8x128xf32>
    %c0_9 = arith.constant 0 : index
    %c0_10 = arith.constant 0 : index
    %14 = vector.load %arg5[%c0_9, %c0_10] : memref<4x128xbf16, #tpu.memory_space<vmem>>, vector<4x128xbf16>
    %cst_11 = arith.constant dense<0.000000e+00> : vector<8x128xf32>
    %15 = tpu.matmul %2, %14, %cst_11 {dimension_numbers = #tpu.dot_dimension_numbers<[1], [0], [0], [1], [0, 0, 1, 1], [], []>} : vector<8x4xbf16>, vector<4x128xbf16>, vector<8x128xf32> -> vector<8x128xf32>
    %16 = arith.addf %13, %15 : vector<8x128xf32>
    %c0_12 = arith.constant 0 : index
    %c0_13 = arith.constant 0 : index
    %17 = vector.load %arg6[%c0_12, %c0_13] : memref<1x128xf32, #tpu.memory_space<vmem>>, vector<1x128xf32>
    %18 = vector.broadcast %17 : vector<1x128xf32> to vector<8x128xf32>
    %19 = arith.addf %16, %18 : vector<8x128xf32>
    %cst_14 = arith.constant 0.00999999977 : f32
    %20 = vector.broadcast %cst_14 : f32 to vector<8x128xf32>
    %21 = arith.mulf %20, %19 : vector<8x128xf32>
    %22 = arith.maximumf %19, %21 : vector<8x128xf32>
    %c0_15 = arith.constant 0 : index
    %c0_16 = arith.constant 0 : index
    %23 = vector.load %arg7[%c0_15, %c0_16] : memref<1x128xf32, #tpu.memory_space<vmem>>, vector<1x128xf32>
    %24 = vector.broadcast %23 : vector<1x128xf32> to vector<8x128xf32>
    %25 = arith.mulf %22, %24 : vector<8x128xf32>
    %cst_17 = arith.constant dense<0.000000e+00> : vector<8xf32>
    %26 = vector.multi_reduction <add>, %25, %cst_17 [1] : vector<8x128xf32> to vector<8xf32>
    %27 = vector.shape_cast %26 : vector<8xf32> to vector<8x1xf32>
    %c0_18 = arith.constant 0 : index
    %c0_19 = arith.constant 0 : index
    %28 = vector.load %arg8[%c0_18, %c0_19] : memref<1x1xf32, #tpu.memory_space<vmem>>, vector<1x1xf32>
    %29 = vector.broadcast %28 : vector<1x1xf32> to vector<8x1xf32>
    %30 = arith.addf %27, %29 : vector<8x1xf32>
    %c0_20 = arith.constant 0 : index
    %c0_21 = arith.constant 0 : index
    %31 = vector.load %arg9[%c0_20, %c0_21] : memref<8x1xf32, #tpu.memory_space<vmem>>, vector<8x1xf32>
    tpu.vector_store %arg9[%c0_20, %c0_21], %30 {strides = array<i32>} : memref<8x1xf32, #tpu.memory_space<vmem>>, vector<8x1xf32>,
    return
  }
  func.func @transform_0(%arg0: i32) -> (i32, i32) {
    %c0_i32 = arith.constant 0 : i32
    %c0_i32_0 = arith.constant 0 : i32
    return %arg0, %c0_i32 : i32, i32
  }
  func.func @transform_1(%arg0: i32) -> (i32, i32) {
    %c0_i32 = arith.constant 0 : i32
    %c0_i32_0 = arith.constant 0 : i32
    %c0_i32_1 = arith.constant 0 : i32
    return %c0_i32, %c0_i32_0 : i32, i32
  }
  func.func @transform_2(%arg0: i32) -> (i32, i32) {
    %c0_i32 = arith.constant 0 : i32
    %c0_i32_0 = arith.constant 0 : i32
    %c0_i32_1 = arith.constant 0 : i32
    return %c0_i32, %c0_i32_0 : i32, i32
  }
  func.func @transform_3(%arg0: i32) -> (i32, i32) {
    %c0_i32 = arith.constant 0 : i32
    %c0_i32_0 = arith.constant 0 : i32
    %c0_i32_1 = arith.constant 0 : i32
    return %c0_i32, %c0_i32_0 : i32, i32
  }
  func.func @transform_4(%arg0: i32) -> (i32, i32) {
    %c0_i32 = arith.constant 0 : i32
    %c0_i32_0 = arith.constant 0 : i32
    %c0_i32_1 = arith.constant 0 : i32
    return %c0_i32, %c0_i32_0 : i32, i32
  }
  func.func @transform_5(%arg0: i32) -> (i32, i32) {
    %c0_i32 = arith.constant 0 : i32
    %c0_i32_0 = arith.constant 0 : i32
    %c0_i32_1 = arith.constant 0 : i32
    return %c0_i32, %c0_i32_0 : i32, i32
  }
  func.func @transform_6(%arg0: i32) -> (i32, i32) {
    %c0_i32 = arith.constant 0 : i32
    %c0_i32_0 = arith.constant 0 : i32
    %c0_i32_1 = arith.constant 0 : i32
    return %c0_i32, %c0_i32_0 : i32, i32
  }
  func.func @transform_7(%arg0: i32) -> (i32, i32) {
    %c0_i32 = arith.constant 0 : i32
    %c0_i32_0 = arith.constant 0 : i32
    %c0_i32_1 = arith.constant 0 : i32
    return %c0_i32, %c0_i32_0 : i32, i32
  }
  func.func @transform_8(%arg0: i32) -> (i32, i32) {
    %c0_i32 = arith.constant 0 : i32
    %c0_i32_0 = arith.constant 0 : i32
    return %arg0, %c0_i32 : i32, i32
  }
}

</mosaic_0001>

<bundles_post_ra>
// kernel: tpu_custom_call.1
= control target key start
LH: loop header
LB: loop body
LE: loop exit
PB: predicated region body
PF: predicated region fallthrough
CT: control target
= control target key end

     0   :  { %s637_s0 = inlined_call_operand.hbm [shape: bf16[8,20], index: 0, kind: input, shape index: {}]   ;;  %s638_s1 = inlined_call_operand.hbm [shape: bf16[16,256], index: 1, kind: input, shape index: {}]   ;;  %s639_s2 = inlined_call_operand.vmem [shape: f32[1,256], index: 2, kind: input, shape index: {}]   ;;  %s640_s3 = inlined_call_operand.hbm [shape: bf16[256,128], index: 3, kind: input, shape index: {}]   ;;  %s641_s4 = inlined_call_operand.vmem [shape: bf16[4,128], index: 4, kind: input, shape index: {}]   ;;  %s642_s5 = inlined_call_operand.vmem [shape: f32[1,128], index: 5, kind: input, shape index: {}]   ;;  %s643_s6 = inlined_call_operand.vmem [shape: f32[1,128], index: 6, kind: input, shape index: {}]   ;;  %s644_s7 = inlined_call_operand.<no memory space> [shape: f32[1,1], index: 7, kind: input, shape index: {}]   ;;  %s645_s8 = inlined_call_operand.vmem [shape: f32[8,1], index: 8, kind: output, shape index: {}]  }
   0x1   :  { %v13_v0 = vstv %s644_s7 }
   0x2   :  { %14 = vst [vmem:[#allocation2] sm:$0x1] %v13_v0 }
   0x3   :  { %15 = vsyncpa [#allocation4], 0 }
   0x4   :  { %16 = vsyncpa [#allocation6], 0  ;;  %s554_s29 = smov [#allocation5]  }
   0x5   :  { %s32_s30 = sshll.u32 %s554_s29, 4  ;;  %s33_s30 = int_to_ptr.vmem [resolvable:$true] %s32_s30 }
   0x6   :  { %s498_s9 = scalar_lea.vmem %s33_s30, 256  ;;  %p503_p1 = scmp.lt.s32.totalorder %s33_s30, %s33_s30 }
   0x7   :  { %p499_p0 = scmp.ne.s32.totalorder %s33_s30, %s498_s9  ;;  %p504_p2 = scmp.lt.s32.totalorder %s498_s9, %s498_s9 }
   0x9   :  { %p505_p3 = por %p504_p2, %p503_p1 }
   0xb   :  { %p506_p4 = pnand %p505_p3, %p499_p0 }
   0xd   :  { %509 = shalt.err (!%p506_p4)
}
   0xe   :  { %s555_s10 = smov 128   ;;  %s556_s11 = smov 8  }
   0xf   :  { %38 = dma.hbm_to_vmem [thread:$0]  %s638_s1, 256, %s33_s30, [#allocation6], %s555_s10, %s555_s10, %s556_s11  }
  0x10   :  { %s557_s7 = smov [#allocation3]   ;;  %s558_s15 = smov [#allocation7]  }
  0x11   :  { %s23_s14 = sshll.u32 %s557_s7, 4  ;;  %s46_s16 = sshll.u32 %s558_s15, 4  ;;  %s24_s14 = int_to_ptr.vmem [resolvable:$true] %s23_s14  ;;  %s47_s16 = int_to_ptr.vmem [resolvable:$true] %s46_s16 }
  0x12   :  { %s518_s17 = scalar_lea.vmem %s24_s14, 64  ;;  %p523_p6 = scmp.lt.s32.totalorder %s24_s14, %s24_s14 }
  0x13   :  { %p519_p5 = scmp.ne.s32.totalorder %s24_s14, %s518_s17  ;;  %p524_p7 = scmp.lt.s32.totalorder %s518_s17, %s518_s17 }
  0x15   :  { %p525_p8 = por %p524_p7, %p523_p6 }
  0x17   :  { %p526_p9 = pnand %p525_p8, %p519_p5 }
  0x19   :  { %529 = shalt.err (!%p526_p9)
}
  0x1a   :  { %26 = dma.hbm_to_vmem [thread:$0]  %s637_s0, 64, %s24_s14, [#allocation4]  }
  0x1b   :  { %s538_s20 = scalar_lea.vmem %s47_s16, 2048  ;;  %p543_p11 = scmp.lt.s32.totalorder %s47_s16, %s47_s16 }
  0x1c   :  { %p539_p10 = scmp.ne.s32.totalorder %s47_s16, %s538_s20  ;;  %p544_p12 = scmp.lt.s32.totalorder %s538_s20, %s538_s20 }
  0x1e   :  { %p545_p13 = por %p544_p12, %p543_p11 }
  0x20   :  { %p546_p0 = pnand %p545_p13, %p539_p10 }
  0x22   :  { %549 = shalt.err (!%p546_p0)
}
  0x23   :  { %s559_s1 = smov 64   ;;  %s560_s21 = smov 4  }
  0x24   :  { %52 = dma.hbm_to_vmem [thread:$0]  %s640_s3, 2048, %s47_s16, [#allocation6], %s559_s1, %s559_s1, %s560_s21  }
  0x25   :  { %550 = dma.done.wait [#allocation4], 64  }
  0x26   :  { %551 = vsyncadd [#allocation4], 4294967232 }
  0x27   :  { %552 = dma.done.wait [#allocation6], 2304  }
  0x28   :  { %553 = vsyncadd [#allocation6], 4294964992  ;;  %v561_v1 = vmov 0   ;;  %v470_v2 = vld [vmem:[#allocation5 + $0x4] ss:$8 sps:$4 sm:$0xff]   ;;  %vm96_vm0 = vcmask 130048   ;;  %v76_v26 = vlaneseq }
  0x29   :  { %132 = vmatprep.mubr.bf16.mxu1 %v561_v1  ;;  %v472_v3 = vld [vmem:[#allocation5] ss:$8 sps:$4 sm:$0xff]   ;;  %v71_v4 = vld [vmem:[#allocation3] sm:$0xf]  ;;  %114 = vmatprep.subr.bf16.mxu1 %v470_v2  ;;  %s562_s0 = smov 112   ;;  %v480_v12 = vld [vmem:[#allocation7 + $0x60] sm:$0xff]  }
  0x2a   :  { %v408_v5 = vcombine.low %v71_v4, %v71_v4  ;;  %v474_v6 = vld [vmem:[#allocation7 + $0x78] sm:$0xff]   ;;  %115 = vmatpush1.bf16.msra.mxu1 %v472_v3  ;;  %v476_v8 = vld [vmem:[#allocation7 + $0x70] sm:$0xff]   ;;  %v478_v10 = vld [vmem:[#allocation7 + $0x68] sm:$0xff]   ;;  %vm189_vm1 = vcmask 1041408   ;;  %v563_v21 = vmov 0.0   ;;  %vm564_vm2 = vmmov 0  }
  0x2b   :  { %v475_v7 = vld [vmem:[#allocation7 + $0x38] sm:$0xff]   ;;  %431 = vmatprep.subr.bf16.mxu0 %v474_v6  ;;  %v477_v9 = vld [vmem:[#allocation7 + $0x30] sm:$0xff]   ;;  %v479_v11 = vld [vmem:[#allocation7 + $0x28] sm:$0xff]   ;;  %453 = vmatprep.subr.bf16.mxu1 %v563_v21  ;;  %vm185_vm3 = vcmask 31744   ;;  %v77_v27 = vshrl.u32 %v76_v26, 7  ;;  %vm397_vm4 = vcmask 7168  }
  0x2c   :  { %183 = vrot.lane.b32.xlu0 %v408_v5, %s562_s0  ;;  %432 = vmatpush3.bf16.msra.mxu0 %v475_v7  ;;  %v481_v13 = vld [vmem:[#allocation7 + $0x20] sm:$0xff]   ;;  %v482_v14 = vld [vmem:[#allocation7 + $0x58] sm:$0xff]   ;;  %v484_v16 = vld [vmem:[#allocation7 + $0x50] sm:$0xff]  }
  0x2d   :  { %407 = vmatmul.mubr.msk.bf16.vlgmr.msra.gmra.mxu1 %vm96_vm0, %v71_v4  ;;  %433 = vmatprep.subr.bf16.mxu0 %v476_v8  ;;  %v483_v15 = vld [vmem:[#allocation7 + $0x18] sm:$0xff]   ;;  %v485_v17 = vld [vmem:[#allocation7 + $0x10] sm:$0xff]   ;;  %v486_v18 = vld [vmem:[#allocation7 + $0x48] sm:$0xff]   ;;  %v78_v28 = vsub.s32 0, %v77_v27  ;;  %v82_v30 = vsub.s32 1, %v77_v27 }
  0x2e   :  { %v487_v19 = vld [vmem:[#allocation7 + $0x8] sm:$0xff]   ;;  %v488_v23 = vld [vmem:[#allocation7 + $0x40] sm:$0xff]   ;;  %455 = vmatprep.mubr.msk.bf16.mxu1 %vm564_vm2, %v563_v21 }
  0x2f   :  { %v179_v20 = vld [vmem:[%s641_s4] sm:$0x3]  ;;  %v489_v24 = vld [vmem:[#allocation7] sm:$0xff]  }
  0x30   :  { %434 = vmatpush3.bf16.msra.mxu0 %v477_v9  ;;  %v191_v22 = vsel %vm189_vm1, %v179_v20, 0  ;;  %v74_v29 = vld [vmem:[%s639_s2] sm:$0x3] }
  0x31   :  { %435 = vmatprep.subr.bf16.mxu0 %v478_v10  ;;  %454 = vmatpush3.bf16.msra.mxu1 %v191_v22  ;;  %v79_v31 = vrot.slane %v74_v29, %v78_v28  ;;  %v83_v32 = vrot.slane %v74_v29, %v82_v30  ;;  %v426_v52 = vld [vmem:[%s642_s5] ss:$0 sm:$0xff] }
  0x32   :  { %v427_v58 = vld [vmem:[%s643_s6] ss:$0 sm:$0xff] }
  0x33   :  { %v428_v61 = vld [vmem:[#allocation2] ss:$0 sm:$0xff] }
  0x34   :  { %436 = vmatpush3.bf16.msra.mxu0 %v479_v11 }
  0x35   :  { %437 = vmatprep.subr.bf16.mxu0 %v480_v12 }
  0x38   :  { %438 = vmatpush3.bf16.msra.mxu0 %v481_v13 }
  0x39   :  { %439 = vmatprep.subr.bf16.mxu0 %v482_v14 }
  0x3c   :  { %440 = vmatpush3.bf16.msra.mxu0 %v483_v15 }
  0x3d   :  { %441 = vmatprep.subr.bf16.mxu0 %v484_v16 }
  0x40   :  { %442 = vmatpush3.bf16.msra.mxu0 %v485_v17 }
  0x41   :  { %443 = vmatprep.subr.bf16.mxu0 %v486_v18 }
  0x44   :  { %444 = vmatpush3.bf16.msra.mxu0 %v487_v19 }
  0x45   :  { %445 = vmatprep.subr.bf16.mxu0 %v488_v23 }
  0x48   :  { %446 = vmatpush3.bf16.msra.mxu0 %v489_v24 }
  0x9e   :  { %v184_v25 = vpop.permute.xlu0 %183 }
  0x9f   :  { %456 = vmatmul.mubr.msk.bf16.vlgmr.msra.gmra.mxu1 %vm185_vm3, %v184_v25 }
  0xed   :  { %v134_v33 = vpop.f32.mrf.mxu1 }
  0xee   :  { %v135_v34 = vadd.f32 %v134_v33, %v79_v31 }
  0xef   :  { %v136_v35 = vpop.f32.mrf.mxu1 }
  0xf0   :  { %v141_v36 = vmul.f32 0.01, %v135_v34  ;;  %v137_v37 = vadd.f32 %v136_v35, %v83_v32 }
  0xf1   :  { %v138_v38 = vpop.f32.mrf.mxu1 }
  0xf2   :  { %v142_v39 = vmul.f32 0.01, %v137_v37  ;;  %v143_v40 = vmax.f32 %v135_v34, %v141_v36 }
  0xf3   :  { %v139_v41 = vpop.f32.mrf.mxu1 }
  0xf4   :  { %v144_v42 = vmax.f32 %v137_v37, %v142_v39  ;;  %v145_v44 = vpack.c.bf16 %v143_v40, %v143_v40 }
  0xf6   :  { %v146_v43 = vpack.c.bf16 %v144_v42, %v144_v42 }
  0xf8   :  { %361 = vmatprep.mubr.bf16.mxu0 %v146_v43 }
  0xf9   :  { %362 = vmatmul.mubr.bf16.vlgmr.msra.gmra.mxu0 %v145_v44 }
 0x15f   :  { %v227_v45 = vpop.f32.mrf.mxu1 }
 0x161   :  { %v457_v46 = vpop.f32.mrf.mxu1 }
 0x163   :  { %v230_v47 = vpop.f32.mrf.mxu1 }
 0x165   :  { %v458_v48 = vpop.f32.mrf.mxu1 }
 0x1b9   :  { %v447_v49 = vpop.f32.mrf.mxu0 }
 0x1bb   :  { %v448_v50 = vpop.f32.mrf.mxu0 }
 0x1bc   :  { %v449_v51 = vadd.f32 %v448_v50, %v447_v49 }
 0x1bd   :  { %v450_v53 = vpop.f32.mrf.mxu0 }
 0x1be   :  { %v364_v54 = vadd.f32 %v449_v51, %v227_v45 }
 0x1bf   :  { %v451_v55 = vpop.f32.mrf.mxu0 }
 0x1c0   :  { %v376_v56 = vadd.f32 %v426_v52, %v364_v54 }
 0x1c2   :  { %v377_v57 = vmul.f32 0.01, %v376_v56 }
 0x1c4   :  { %v378_v59 = vmax.f32 %v376_v56, %v377_v57 }
 0x1c6   :  { %v386_v60 = vmul.f32 %v427_v58, %v378_v59 }
 0x1c8   :  { %387 = vadd.xlane.f32.xlu0 %v386_v60 }
 0x251   :  { %v388_v62 = vpop.xlane.xlu0 %387 }
 0x252   :  { %v396_v63 = vadd.f32 %v428_v61, %v388_v62 }
 0x254   :  { %398 = vst.msk [vmem:[%s645_s8] sm:$0xff] %vm397_vm4, %v396_v63 }
 0x255   :  { %403 = vsyncpa [#allocation4], 1 }
 0x256   :  { %404 = vsyncpa [#allocation6], 1 }

</bundles_post_ra>
